<compile_context>
chip_gen: v7x
topology: tpu7x:2x2x1
jax: 0.10.0
libtpu: 0.0.40
codegen_flags: <defaults>
</compile_context>

<pallas_src>
import functools

import jax
import jax.numpy as jnp
from jax.experimental import pallas as pl
from jax.experimental.pallas import tpu as pltpu


def _poly_kernel(w_ref, b_ref, x_ref, o_ref):
    """w_ref: VMEM (D,1) f32, b_ref: SMEM (1,) f32, x_ref: VMEM (D,TB), o_ref: VMEM (1,TB)."""
    x = x_ref[...].astype(jnp.float32)        # (D, TB): batch on lanes; upcast in-kernel
    w = w_ref[...]                            # (D, 1) f32, broadcasts along lanes
    # Dense multiply + sublane reduction over the degree axis (XLU), then add bias scalar.
    o_ref[...] = jnp.sum(w * x, axis=0, keepdims=True) + b_ref[0]


def _round_up(n, m):
    return ((n + m - 1) // m) * m


def _choose_batch_tile(B, D, itemsize, target_buf_bytes=2 << 20, min_grid=4):
    """Lane tile TB (multiple of 128): ~target_buf_bytes per input buffer (D<8 sublane-pads
    to 8 rows), capped so large batches keep >= min_grid grid steps (v7x has 2 TCs)."""
    lane_pad = _round_up(B, 128)
    sub = max(D, 8)                                       # sublane-padded rows per x tile
    tb = max(128, (target_buf_bytes // (sub * itemsize)) // 128 * 128)
    if lane_pad >= min_grid * 128:
        tb = min(tb, _round_up(pl.cdiv(lane_pad, min_grid), 128))
    return min(tb, lane_pad)


@functools.partial(jax.jit, static_argnames=("batch_tile",))
def polynomial_regression(x, weight, bias, *, batch_tile=None):
    """Forward pass of PolynomialRegression: x @ weight.T + bias.

    Args:
      x:      (batch, degree) float32 or bfloat16
      weight: (1, degree)  -- torch nn.Linear.weight layout
      bias:   (1,)         -- torch nn.Linear.bias layout
      batch_tile: optional lane-tile override (multiple of 128); auto-sized if None.

    Returns:
      (batch, 1) float32
    """
    B, D = x.shape

    # Stream x in its native dtype if it is already bf16/f32 (halves HBM read for bf16);
    # the upcast to f32 happens inside the kernel after the load.
    if x.dtype not in (jnp.bfloat16, jnp.float32):
        x = x.astype(jnp.float32)
    itemsize = jnp.dtype(x.dtype).itemsize

    TB = batch_tile if batch_tile is not None else _choose_batch_tile(B, D, itemsize)
    assert TB % 128 == 0
    B_pad = _round_up(B, TB)

    # Pad + transpose to feature-major (D, B_pad); fused with astype under this jit so the
    # dominant array is rewritten at most once before the kernel streams it.
    x_t = jnp.pad(x, ((0, B_pad - B), (0, 0))).T           # (D, B_pad), batch on lanes

    w_col = weight.reshape(D, 1).astype(jnp.float32)       # (D, 1) VMEM column
    b_1d = bias.reshape(1).astype(jnp.float32)             # (1,)  SMEM scalar

    out_t = pl.pallas_call(
        _poly_kernel,
        out_shape=jax.ShapeDtypeStruct((1, B_pad), jnp.float32),
        grid=(B_pad // TB,),
        in_specs=[
            pl.BlockSpec((D, 1), lambda i: (0, 0)),                 # weight column (resident)
            pl.BlockSpec(memory_space=pltpu.MemorySpace.SMEM),      # bias (1,) in SMEM
            pl.BlockSpec((D, TB), lambda i: (0, i)),                # x tile: full D, TB lanes
        ],
        out_specs=pl.BlockSpec((1, TB), lambda i: (0, i)),          # lane-dense output slab
        compiler_params=pltpu.CompilerParams(
            dimension_semantics=("parallel",),                      # batch axis -> 2 TCs on v7x
        ),
        cost_estimate=pl.CostEstimate(
            flops=2 * B_pad * D,
            bytes_accessed=B_pad * D * itemsize + B_pad * 4 + D * 4 + 4,
            transcendentals=0,
        ),
    )(w_col, b_1d, x_t)

    return out_t[0, :B].reshape(B, 1)


if __name__ == "__main__":
    degree = 4
    batch = 8

    key = jax.random.PRNGKey(0)
    kx, kw, kb = jax.random.split(key, 3)

    # Deterministic params mimicking nn.Linear init: U(-1/sqrt(degree), 1/sqrt(degree)).
    bound = 1.0 / jnp.sqrt(jnp.float32(degree))
    weight = jax.random.uniform(kw, (1, degree), jnp.float32, -bound, bound)
    bias = jax.random.uniform(kb, (1,), jnp.float32, -bound, bound)

    x = jax.random.normal(kx, (batch, degree), jnp.float32)

    out = polynomial_regression(x, weight, bias)
    out = jax.block_until_ready(out)

    # Reference check against plain JAX (equivalent to torch linear forward).
    ref = x @ weight.T + bias
    assert out.shape == (batch, 1)
    assert jnp.allclose(out, ref, atol=1e-5, rtol=1e-5)

    print("KERNEL_OK")
</pallas_src>

<mosaic_0001>
module attributes {stable_mosaic.version = 11 : i64} {
  func.func @_poly_kernel(%arg0: i32, %arg1: memref<4x1xf32, #tpu.memory_space<vmem>>, %arg2: memref<1xf32, #tpu.memory_space<smem>>, %arg3: memref<4x128xf32, #tpu.memory_space<vmem>>, %arg4: memref<1x128xf32, #tpu.memory_space<vmem>>) attributes {dimension_semantics = [#tpu.dimension_semantics<parallel>], iteration_bounds = array<i64: 1>, scalar_prefetch = 0 : i64, scratch_operands = 0 : i64, tpu.core_type = #tpu.core_type<tc>, window_params = [{pipeline_mode = #tpu.pipeline_mode<synchronous>, transform_indices = @transform_0, window_bounds = array<i64: 4, 1>}, {transform_indices = @transform_1, window_bounds = array<i64: 1>}, {transform_indices = @transform_2, window_bounds = array<i64: 4, 128>}, {transform_indices = @transform_3, window_bounds = array<i64: 1, 128>}]} {
    %c0 = arith.constant 0 : index
    %c0_0 = arith.constant 0 : index
    %0 = vector.load %arg3[%c0, %c0_0] : memref<4x128xf32, #tpu.memory_space<vmem>>, vector<4x128xf32>
    %c0_1 = arith.constant 0 : index
    %c0_2 = arith.constant 0 : index
    %1 = vector.load %arg1[%c0_1, %c0_2] : memref<4x1xf32, #tpu.memory_space<vmem>>, vector<4x1xf32>
    %2 = vector.broadcast %1 : vector<4x1xf32> to vector<4x128xf32>
    %3 = arith.mulf %2, %0 : vector<4x128xf32>
    %cst = arith.constant dense<0.000000e+00> : vector<128xf32>
    %4 = vector.multi_reduction <add>, %3, %cst [0] : vector<4x128xf32> to vector<128xf32>
    %5 = vector.shape_cast %4 : vector<128xf32> to vector<1x128xf32>
    %c0_3 = arith.constant 0 : index
    %6 = memref.load %arg2[%c0_3] : memref<1xf32, #tpu.memory_space<smem>>
    %7 = vector.broadcast %6 : f32 to vector<1x128xf32>
    %8 = arith.addf %5, %7 : vector<1x128xf32>
    %c0_4 = arith.constant 0 : index
    %c0_5 = arith.constant 0 : index
    %9 = vector.load %arg4[%c0_4, %c0_5] : memref<1x128xf32, #tpu.memory_space<vmem>>, vector<1x128xf32>
    tpu.vector_store %arg4[%c0_4, %c0_5], %8 {strides = array<i32>} : memref<1x128xf32, #tpu.memory_space<vmem>>, vector<1x128xf32>,
    return
  }
  func.func @transform_0(%arg0: i32) -> (i32, i32) {
    %c0_i32 = arith.constant 0 : i32
    %c0_i32_0 = arith.constant 0 : i32
    %c0_i32_1 = arith.constant 0 : i32
    return %c0_i32, %c0_i32_0 : i32, i32
  }
  func.func @transform_1(%arg0: i32) -> i32 {
    %c0_i32 = arith.constant 0 : i32
    %c0_i32_0 = arith.constant 0 : i32
    return %c0_i32 : i32
  }
  func.func @transform_2(%arg0: i32) -> (i32, i32) {
    %c0_i32 = arith.constant 0 : i32
    %c0_i32_0 = arith.constant 0 : i32
    return %c0_i32, %arg0 : i32, i32
  }
  func.func @transform_3(%arg0: i32) -> (i32, i32) {
    %c0_i32 = arith.constant 0 : i32
    %c0_i32_0 = arith.constant 0 : i32
    return %c0_i32, %arg0 : i32, i32
  }
}

</mosaic_0001>

<bundles_post_ra>
// kernel: polynomial_regression.1
= control target key start
LH: loop header
LB: loop body
LE: loop exit
PB: predicated region body
PF: predicated region fallthrough
CT: control target
= control target key end

     0   :  { %v41_v0 = vmov 0   ;;  %vm23_vm0 = vcmask 1043456   ;;  %s74_s0 = inlined_call_operand.vmem [shape: f32[4,1], index: 0, kind: input, shape index: {}]   ;;  %s75_s2 = inlined_call_operand.vmem [shape: f32[4,128], index: 2, kind: input, shape index: {}]   ;;  %s76_s1 = inlined_call_operand.<no memory space> [shape: f32[1], index: 1, kind: input, shape index: {}]   ;;  %s77_s3 = inlined_call_operand.vmem [shape: f32[1,128], index: 3, kind: output, shape index: {}]  }
   0x1   :  { %40 = vset.pattern.permute.xlu0 %v41_v0  ;;  %v16_v1 = vld [vmem:[%s74_s0] sm:$0xf]  ;;  %v32_v11 = vstv %s76_s1 }
   0x2   :  { %19 = vperm.xlu0 %40, %v16_v1   ;;  %v15_v2 = vld [vmem:[%s75_s2] sm:$0xf] }
  0x81   :  { %v20_v3 = vpop.permute.xlu0 %19 }
  0x82   :  { %v22_v4 = vmul.f32 %v20_v3, %v15_v2 }
  0x84   :  { %v24_v5 = vsel %vm23_vm0, %v22_v4, 0.0 }
  0x85   :  { %v25_v6 = vrot.slane %v24_v5, 4 }
  0x87   :  { %v26_v7 = vadd.f32 %v25_v6, %v24_v5 }
  0x89   :  { %v27_v8 = vrot.slane %v26_v7, 2 }
  0x8b   :  { %v28_v9 = vadd.f32 %v27_v8, %v26_v7 }
  0x8d   :  { %v29_v10 = vrot.slane %v28_v9, 1 }
  0x8f   :  { %v30_v12 = vadd.f32 %v29_v10, %v28_v9 }
  0x91   :  { %v33_v13 = vadd.f32 %v32_v11, %v30_v12 }
  0x93   :  { %34 = vst [vmem:[%s77_s3] sm:$0x1] %v33_v13 }

</bundles_post_ra>
